<compile_context>
chip_gen: v6e
topology: v6e:2x2x1
jax: 0.10.0
libtpu: 0.0.40
codegen_flags: <defaults>
</compile_context>

<pallas_src>
import jax
import jax.numpy as jnp
from jax.experimental import pallas as pl
from jax.experimental.pallas import tpu as pltpu


def _relu_block_kernel(x_ref, w_ref, o_ref):
    # x_ref: (TB, In), w_ref: (In, Out_pad), o_ref: (TB, Out_pad)
    # Native-dtype operands feed the MXU; accumulate in f32.
    y = jnp.dot(x_ref[...], w_ref[...], preferred_element_type=jnp.float32)
    o_ref[...] = jnp.maximum(y, 0.0).astype(o_ref.dtype)


def _round_up(n, m):
    return ((n + m - 1) // m) * m


def relu_block(x, weight):
    """x: (B, input_size); weight: (output_size, input_size) PyTorch-style.

    Returns ReLU(x @ weight.T) with shape (B, output_size).
    """
    B, in_sz = x.shape
    out_sz, in_sz_w = weight.shape
    assert in_sz == in_sz_w

    # --- Layout prep (one-time, XLA side, outside the hot loop) -------------
    # (Out, In) -> (In, Out): contract the shared In axis with no in-kernel
    # transpose; lane-dense along Out.
    w_t = weight.T

    # Lane-dense output: pad Out to a multiple of 128 with zero columns.
    # ReLU(x @ 0) == 0, so padding is exact and sliced off below.
    out_pad = _round_up(out_sz, 128)
    if out_pad != out_sz:
        w_t = jnp.pad(w_t, ((0, 0), (0, out_pad - out_sz)))

    # Batch tile: multiple of 8 sublanes, capped at 256 rows per step.
    if B >= 256:
        tb = 256
    else:
        tb = _round_up(B, 8)
    b_pad = _round_up(B, tb)
    x_p = x if b_pad == B else jnp.pad(x, ((0, b_pad - B), (0, 0)))

    grid = (b_pad // tb,)

    out = pl.pallas_call(
        _relu_block_kernel,
        out_shape=jax.ShapeDtypeStruct((b_pad, out_pad), x.dtype),
        grid_spec=pltpu.PrefetchScalarGridSpec(
            num_scalar_prefetch=0,
            grid=grid,
            in_specs=[
                # x streams over the batch grid.
                pl.BlockSpec((tb, in_sz), lambda i: (i, 0)),
                # weight stays VMEM-resident across all batch tiles.
                pl.BlockSpec((in_sz, out_pad), lambda i: (0, 0)),
            ],
            out_specs=pl.BlockSpec((tb, out_pad), lambda i: (i, 0)),
        ),
        compiler_params=pltpu.CompilerParams(
            # Rows are independent -> parallel batch axis (2x on v7x megacore,
            # neutral on v5e/v6e).
            dimension_semantics=("parallel",),
        ),
    )(x_p, w_t)

    # Strip batch/output padding.
    return out[:B, :out_sz]


if __name__ == "__main__":
    # Small shapes consistent with the module's forward: 2-D (batch, features).
    batch = 8
    input_size = 32
    output_size = 16

    key = jax.random.PRNGKey(0)
    kx, kw = jax.random.split(key)

    x = jax.random.normal(kx, (batch, input_size), dtype=jnp.float32)
    # PyTorch Linear stores weight as (out, in); kaiming-uniform-ish scale.
    bound = 1.0 / jnp.sqrt(jnp.float32(input_size))
    weight = jax.random.uniform(
        kw, (output_size, input_size), dtype=jnp.float32, minval=-bound, maxval=bound
    )

    out = relu_block(x, weight)
    out = jax.block_until_ready(out)

    # Sanity check against pure-JAX reference: ReLU(x @ W^T).
    ref = jnp.maximum(x @ weight.T, 0.0)
    assert out.shape == (batch, output_size)
    assert jnp.allclose(out, ref, atol=1e-5, rtol=1e-5)
    assert jnp.all(out >= 0.0)

    print("KERNEL_OK")
</pallas_src>

<mosaic_0001>
module attributes {stable_mosaic.version = 11 : i64} {
  func.func @_relu_block_kernel(%arg0: i32, %arg1: memref<8x32xf32, #tpu.memory_space<vmem>>, %arg2: memref<32x128xf32, #tpu.memory_space<vmem>>, %arg3: memref<8x128xf32, #tpu.memory_space<vmem>>) attributes {dimension_semantics = [#tpu.dimension_semantics<parallel>], iteration_bounds = array<i64: 1>, scalar_prefetch = 0 : i64, scratch_operands = 0 : i64, tpu.core_type = #tpu.core_type<tc>, window_params = [{transform_indices = @transform_0, window_bounds = array<i64: 8, 32>}, {pipeline_mode = #tpu.pipeline_mode<synchronous>, transform_indices = @transform_1, window_bounds = array<i64: 32, 128>}, {transform_indices = @transform_2, window_bounds = array<i64: 8, 128>}]} {
    %c0 = arith.constant 0 : index
    %c0_0 = arith.constant 0 : index
    %0 = vector.load %arg1[%c0, %c0_0] : memref<8x32xf32, #tpu.memory_space<vmem>>, vector<8x32xf32>
    %c0_1 = arith.constant 0 : index
    %c0_2 = arith.constant 0 : index
    %1 = vector.load %arg2[%c0_1, %c0_2] : memref<32x128xf32, #tpu.memory_space<vmem>>, vector<32x128xf32>
    %cst = arith.constant dense<0.000000e+00> : vector<8x128xf32>
    %2 = tpu.matmul %0, %1, %cst {dimension_numbers = #tpu.dot_dimension_numbers<[1], [0], [0], [1], [0, 0, 1, 1], [], []>} : vector<8x32xf32>, vector<32x128xf32>, vector<8x128xf32> -> vector<8x128xf32>
    %cst_3 = arith.constant 0.000000e+00 : f32
    %3 = vector.broadcast %cst_3 : f32 to vector<8x128xf32>
    %4 = arith.maximumf %2, %3 : vector<8x128xf32>
    %c0_4 = arith.constant 0 : index
    %c0_5 = arith.constant 0 : index
    %5 = vector.load %arg3[%c0_4, %c0_5] : memref<8x128xf32, #tpu.memory_space<vmem>>, vector<8x128xf32>
    tpu.vector_store %arg3[%c0_4, %c0_5], %4 {strides = array<i32>} : memref<8x128xf32, #tpu.memory_space<vmem>>, vector<8x128xf32>,
    return
  }
  func.func @transform_0(%arg0: i32) -> (i32, i32) {
    %c0_i32 = arith.constant 0 : i32
    %c0_i32_0 = arith.constant 0 : i32
    return %arg0, %c0_i32 : i32, i32
  }
  func.func @transform_1(%arg0: i32) -> (i32, i32) {
    %c0_i32 = arith.constant 0 : i32
    %c0_i32_0 = arith.constant 0 : i32
    %c0_i32_1 = arith.constant 0 : i32
    return %c0_i32, %c0_i32_0 : i32, i32
  }
  func.func @transform_2(%arg0: i32) -> (i32, i32) {
    %c0_i32 = arith.constant 0 : i32
    %c0_i32_0 = arith.constant 0 : i32
    return %arg0, %c0_i32 : i32, i32
  }
}

</mosaic_0001>

<bundles_post_ra>
// kernel: tpu_custom_call.1
= control target key start
LH: loop header
LB: loop body
LE: loop exit
PB: predicated region body
PF: predicated region fallthrough
CT: control target
= control target key end

     0   :  { %7 = vsyncpa [#allocation3], 0  ;;  %s256_s0 = inlined_call_operand.hbm [shape: f32[8,32], index: 0, kind: input, shape index: {}]   ;;  %s257_s1 = inlined_call_operand.hbm [shape: f32[32,128], index: 1, kind: input, shape index: {}]   ;;  %s258_s2 = inlined_call_operand.hbm [shape: f32[8,128], index: 2, kind: output, shape index: {}]  }
   0x1   :  { %8 = vsyncpa [#allocation6], 0 }
   0x2   :  { %9 = vsyncpa [#allocation4], 0  ;;  %s225_s9 = smov [#allocation2]   ;;  %s226_s11 = smov [#allocation5]  }
   0x3   :  { %s16_s10 = sshll.u32 %s225_s9, 4  ;;  %s25_s12 = sshll.u32 %s226_s11, 4  ;;  %s17_s10 = int_to_ptr.vmem [resolvable:$true] %s16_s10  ;;  %s26_s12 = int_to_ptr.vmem [resolvable:$true] %s25_s12 }
   0x4   :  { %s167_s13 = scalar_lea.vmem %s17_s10, 128  ;;  %p172_p1 = scmp.lt.s32.totalorder %s17_s10, %s17_s10 }
   0x5   :  { %p168_p0 = scmp.ne.s32.totalorder %s17_s10, %s167_s13  ;;  %p173_p2 = scmp.lt.s32.totalorder %s167_s13, %s167_s13 }
   0x7   :  { %p174_p3 = por %p173_p2, %p172_p1 }
   0x9   :  { %p175_p4 = pnand %p174_p3, %p168_p0 }
   0xb   :  { %178 = shalt.err (!%p175_p4)
}
   0xc   :  { %19 = dma.hbm_to_vmem [thread:$0]  %s256_s0, 128, %s17_s10, [#allocation3]  }
   0xd   :  { %s187_s16 = scalar_lea.vmem %s26_s12, 512  ;;  %p192_p6 = scmp.lt.s32.totalorder %s26_s12, %s26_s12 }
   0xe   :  { %p188_p5 = scmp.ne.s32.totalorder %s26_s12, %s187_s16  ;;  %p193_p7 = scmp.lt.s32.totalorder %s187_s16, %s187_s16 }
  0x10   :  { %p194_p8 = por %p193_p7, %p192_p6 }
  0x12   :  { %p195_p9 = pnand %p194_p8, %p188_p5 }
  0x14   :  { %198 = shalt.err (!%p195_p9)
}
  0x15   :  { %s227_s17 = smov 128   ;;  %s228_s18 = smov 8  }
  0x16   :  { %31 = dma.hbm_to_vmem [thread:$0]  %s257_s1, 512, %s26_s12, [#allocation6], %s227_s17, %s227_s17, %s228_s18  }
  0x17   :  { %219 = dma.done.wait [#allocation3], 128  }
  0x18   :  { %220 = vsyncadd [#allocation3], 4294967168 }
  0x19   :  { %221 = dma.done.wait [#allocation6], 512  }
  0x1a   :  { %222 = vsyncadd [#allocation6], 4294966784  ;;  %v229_v0 = vmov 0.0   ;;  %vm230_vm0 = vmmov 0   ;;  %v42_v1 = vld [vmem:[#allocation5 + $0x18] sm:$0xff]  ;;  %v41_v2 = vld [vmem:[#allocation5 + $0x10] sm:$0xff] }
  0x1b   :  { %141 = vmatprep.subr.mxu0 %v229_v0  ;;  %149 = vmatprep.mubr.msk.f32.mxu0 %vm230_vm0, %v229_v0  ;;  %v40_v3 = vld [vmem:[#allocation5 + $0x8] sm:$0xff]  ;;  %v39_v4 = vld [vmem:[#allocation5] sm:$0xff]  ;;  %v38_v5 = vld [vmem:[#allocation2] sm:$0xff]  ;;  %vm43_vm1 = vcmask 261120   ;;  %s231_s0 = smov [#allocation7]  }
  0x1c   :  { %142 = vmatpush3.msra.mxu0 %v42_v1  ;;  %s125_s1 = sshll.u32 %s231_s0, 4  ;;  %s126_s1 = int_to_ptr.vmem [resolvable:$true] %s125_s1 }
  0x1d   :  { %143 = vmatprep.subr.mxu0 %v229_v0  ;;  %s199_s21 = scalar_lea.vmem %s126_s1, 128  ;;  %p204_p11 = scmp.lt.s32.totalorder %s126_s1, %s126_s1 }
  0x1e   :  { %144 = vmatpush3.msra.mxu0 %v41_v2  ;;  %p200_p10 = scmp.ne.s32.totalorder %s126_s1, %s199_s21  ;;  %p205_p12 = scmp.lt.s32.totalorder %s199_s21, %s199_s21 }
  0x1f   :  { %145 = vmatprep.subr.mxu0 %v229_v0 }
  0x20   :  { %146 = vmatpush3.msra.mxu0 %v40_v3  ;;  %p206_p13 = por %p205_p12, %p204_p11 }
  0x21   :  { %147 = vmatprep.subr.mxu0 %v229_v0 }
  0x22   :  { %148 = vmatpush3.msra.mxu0 %v39_v4  ;;  %p207_p0 = pnand %p206_p13, %p200_p10 }
  0x23   :  { %150 = vmatmul.mubr.msk.f32.vlgmr.msra.gmra.mxu0 %vm43_vm1, %v38_v5 }
  0xe3   :  { %v113_v6 = vpop.f32.mrf.mxu0 }
  0xe4   :  { %v117_v7 = vmax.f32 %v113_v6, 0.0 }
  0xe5   :  { %v151_v8 = vpop.f32.mrf.mxu0 }
  0xe6   :  { %118 = vst [vmem:[#allocation7] sm:$0xff] %v117_v7 }
  0xe7   :  { %210 = shalt.err (!%p207_p0)
}
  0xe8   :  { %128 = dma.vmem_to_hbm [thread:$0]  %s126_s1, 128, %s258_s2, [#allocation4]  }
  0xe9   :  { %223 = dma.done.wait [#allocation4], 128  }
  0xea   :  { %224 = vsyncadd [#allocation4], 4294967168 }
  0xeb   :  { %132 = vsyncpa [#allocation3], 1 }
  0xec   :  { %133 = vsyncpa [#allocation6], 1 }
  0xed   :  { %134 = vsyncpa [#allocation4], 1 }

</bundles_post_ra>
